<compile_context>
chip_gen: v6e
topology: v6e:2x2x1
jax: 0.10.0
libtpu: 0.0.40
codegen_flags: <defaults>
</compile_context>

<pallas_src>
import functools
import math

import numpy as np
import jax
import jax.numpy as jnp
from jax.experimental import pallas as pl

# ----------------------- small synthetic configuration -----------------------
B = 2                # number of dialogues in the batch
WIN = 4              # window size (utterances per dialogue)
SEQ = 8              # PLM sequence length
HIDDEN = 128         # roberta hidden_size (h_dim)
COMET = 64           # comet_hidden_size (l_dim)
NUM_CLASS = 7
NUM_COMET_REL = 9    # 9 comet relations per utterance
NUM_FUTURE_UTTS = 0
VOCAB = 100
MAX_LEN = 240        # RelTemporalEncoding table length


# =============================== fused Pallas kernel ===============================
def graph_erc_kernel(h_ref, maskb_ref, rte_ref, aggc_ref, w128_ref, w64_ref, b_ref,
                     logits_ref, *, n, s, cuu_rows):
    """encoder (CLS attention) + RelTemporalEncoding + MultiDimGNN adapt + prediction head.

    Operand layout (all packed slabs, static lane/row slices are zero-cost views):
      w128_ref [H, 7H] lanes: 0:3H = wq|wk|wv, 3H:4H = wo, 4H:5H = adapt0,
                              5H:6H = head1(utt half), 6H:7H = head2 (lane-padded to 128)
      w64_ref  [L, 2H] lanes: 0:H = adapt1|adapt2 (merged), H:2H = head1(know half)
      b_ref    [8, H]  rows : 0 = bo, 1 = b_adapt0, 2 = b_adapt1|b_adapt2, 3 = b_h1, 4 = b_h2
    """
    h_dim = rte_ref.shape[1]
    l_dim = aggc_ref.shape[1]

    h = h_ref[...]                                                        # [N*S, H]
    w128 = w128_ref[...]                                                  # [H, 7H]
    w64 = w64_ref[...]                                                    # [L, 2H]
    b = b_ref[...]                                                        # [8, H]

    # ---- stand-in PLM: fused QKV projection (one MXU push over all tokens) ----
    qkv = jnp.dot(h, w128[:, 0:3 * h_dim],
                  preferred_element_type=jnp.float32)                     # [N*S, 3H]
    k = qkv[:, h_dim:2 * h_dim]                                           # [N*S, H]
    v = qkv[:, 2 * h_dim:3 * h_dim]                                       # [N*S, H]
    cls = h.reshape(n, s, h_dim)[:, 0, :]                                 # [N, H] CLS tokens
    q = qkv.reshape(n, s, 3 * h_dim)[:, 0, 0:h_dim]                       # [N, H] == cls @ wq

    # ---- single-head CLS attention as two dense 2-D matmuls + block-diagonal mask ----
    scores = jax.lax.dot_general(q, k, (((1,), (1,)), ((), ())),
                                 preferred_element_type=jnp.float32)      # [N, N*S]
    scores = scores * (1.0 / math.sqrt(h_dim)) + maskb_ref[...]
    scores = scores - jnp.max(scores, axis=-1, keepdims=True)
    w = jnp.exp(scores)
    w = w * pl.reciprocal(jnp.sum(w, axis=-1, keepdims=True), approx=True)
    ctx = jnp.dot(w, v, preferred_element_type=jnp.float32)               # [N, H]
    x_enc = jnp.tanh(jnp.dot(cls + ctx, w128[:, 3 * h_dim:4 * h_dim],
                             preferred_element_type=jnp.float32) + b[0:1, :])

    # ---- RelTemporalEncoding: x + Linear(pe[t]) (addend precomputed at trace time) ----
    x = x_enc + rte_ref[...]                                              # [N, H]

    # ---- MultiDimGNN adapt: type-0 matmul + ONE merged matmul for types 1/2 ----
    utt_res = jnp.tanh(jnp.dot(x, w128[:, 4 * h_dim:5 * h_dim],
                               preferred_element_type=jnp.float32) + b[1:2, :])      # [N, H]
    merged = jnp.tanh(jnp.dot(aggc_ref[...], w64[:, 0:h_dim],
                              preferred_element_type=jnp.float32) + b[2:3, :])       # [N+9N, H]
    # rows 0:n, lanes 0:l_dim  == tanh(agg   @ adapt1 + b1)   (type-1 / cuu_know nodes)
    # rows n:,  lanes l_dim:   == tanh(comet @ adapt2 + b2)   (type-2 nodes, unused downstream)
    # TODO(synk): MultiDimHGT / GeneralConv message-passing layers (self.gcs) are undefined in
    # the provided source; they are treated as identity (hgt_features == adapt output).

    # ---- gather cuu / cuu_know rows with static slices, then the prediction head ----
    tgt = jnp.concatenate([utt_res[r:r + 1, :] for r in cuu_rows], axis=0)           # [B, H]
    know = jnp.concatenate([merged[r:r + 1, 0:l_dim] for r in cuu_rows], axis=0)     # [B, L]
    hid = jnp.tanh(
        jnp.dot(tgt, w128[:, 5 * h_dim:6 * h_dim], preferred_element_type=jnp.float32)
        + jnp.dot(know, w64[:, h_dim:2 * h_dim], preferred_element_type=jnp.float32)
        + b[3:4, :])                                                                  # [B, H]
    # lane-dense logits: real classes live in the first NUM_CLASS lanes, rest are zero.
    logits_ref[...] = jnp.dot(hid, w128[:, 6 * h_dim:7 * h_dim],
                              preferred_element_type=jnp.float32) + b[4:5, :]


def graph_erc_fused(p, h_flat, maskb, rte_add, aggc, cuu_rows):
    """One gridless pallas_call: whole-array VMEM blocks (total footprint < 1 MiB)."""
    n = rte_add.shape[0]
    s = h_flat.shape[0] // n
    b = len(cuu_rows)
    kernel = functools.partial(graph_erc_kernel, n=n, s=s, cuu_rows=tuple(cuu_rows))
    return pl.pallas_call(
        kernel,
        out_shape=jax.ShapeDtypeStruct((b, HIDDEN), jnp.float32),   # lane-padded logits
    )(h_flat, maskb, rte_add, aggc, p["w128"], p["w64"], p["bias"])


# =============================== forward pass =================================
def graph_erc_forward(p, inputs, mask, comet_inputs, comet_mask):
    Bv, WINv = comet_mask.shape
    N, S = inputs.shape

    # --- encoder(inputs, attention_mask=mask)[0][:, 0, :] ---
    # TODO(synk): pretrained RobertaModel/RobertaTokenizer cannot be reproduced in-script;
    # stand-in = deterministic token+position embedding + one fused CLS-attention layer.
    h = p["tok_emb"][inputs] + p["pos_emb"][None, :, :]                  # [N, S, H]
    h_flat = h.reshape(N * S, HIDDEN)

    # Block-diagonal additive attention mask [N, N*S]: row i attends only to its own S tokens,
    # masked tokens inside the block (and every off-block column) get -1e9.
    maskf = mask.astype(jnp.float32)
    eye = jnp.eye(N, dtype=jnp.float32)
    diag_bias = (1.0 - maskf) * (-1e9)                                   # [N, S]
    maskb = (eye[:, :, None] * (diag_bias[None, :, :] + 1e9) - 1e9).reshape(N, N * S)

    # --- RelTemporalEncoding addend precomputed at trace time (utt_pos is static) ---
    utt_pos = jnp.tile(jnp.arange(WINv, dtype=jnp.int32), N // WINv)
    rte_add = jnp.dot(p["pe"][utt_pos], p["w_rte"]) + p["b_rte"]         # [N, H]

    cuu_pos = (WINv - 1) if NUM_FUTURE_UTTS == 0 else (WINv - 1) // 2
    cuu_rows = [i * WINv + cuu_pos for i in range(Bv)]                   # static row indices
    latent_params = dict()                                               # forward never fills it

    comet_utt_z = jnp.mean(comet_inputs, axis=-2)                        # [B, WIN, COMET]
    agg = comet_utt_z.reshape(N, COMET)                                  # type-1 nodes (64-wide)
    comet_flat = comet_inputs.reshape(N * NUM_COMET_REL, COMET)          # type-2 nodes (64-wide)
    aggc = jnp.concatenate([agg, comet_flat], axis=0)                    # [N*(1+9), COMET]

    # TODO(synk): node_type / edge_index / edge_type / edge_time (kepdim_make_graph) are consumed
    # only by the MultiDimHGT conv stack, which is undefined in the provided source; the
    # message-passing layers are treated as identity, so edge construction is skipped here.

    logits_pad = graph_erc_fused(p, h_flat, maskb, rte_add, aggc, cuu_rows)
    return logits_pad[:, :NUM_CLASS], latent_params


# ============================ deterministic params ============================
def init_params(key):
    def nrm(k, shape, scale=0.02):
        return scale * jax.random.normal(k, shape, jnp.float32)

    ks = jax.random.split(key, 16)
    p = {}
    p["tok_emb"] = nrm(ks[0], (VOCAB, HIDDEN), 1.0)
    p["pos_emb"] = nrm(ks[1], (SEQ, HIDDEN), 0.1)

    wq, wk = nrm(ks[2], (HIDDEN, HIDDEN)), nrm(ks[3], (HIDDEN, HIDDEN))
    wv, wo = nrm(ks[4], (HIDDEN, HIDDEN)), nrm(ks[5], (HIDDEN, HIDDEN))
    bo = jnp.zeros((HIDDEN,), jnp.float32)

    # RelTemporalEncoding sinusoidal table (fixed, as in HGT) + its Linear
    pos = np.arange(MAX_LEN, dtype=np.float32)[:, None]
    div = np.exp(np.arange(0, HIDDEN, 2, dtype=np.float32) * -(math.log(10000.0) / HIDDEN))
    pe = np.zeros((MAX_LEN, HIDDEN), np.float32)
    pe[:, 0::2] = np.sin(pos * div) / math.sqrt(HIDDEN)
    pe[:, 1::2] = np.cos(pos * div) / math.sqrt(HIDDEN)
    p["pe"] = jnp.asarray(pe)
    p["w_rte"] = nrm(ks[6], (HIDDEN, HIDDEN))
    p["b_rte"] = jnp.zeros((1, HIDDEN), jnp.float32)

    # MultiDimGNN adapt_ws — type 0: h_dim->h_dim; types 1/2: l_dim->l_dim (true 64x64)
    w_adapt0, b_adapt0 = nrm(ks[7], (HIDDEN, HIDDEN)), nrm(ks[8], (HIDDEN,))
    w_adapt1, b_adapt1 = nrm(ks[9], (COMET, COMET)), nrm(ks[10], (COMET,))
    w_adapt2, b_adapt2 = nrm(ks[11], (COMET, COMET)), nrm(ks[12], (COMET,))

    # cu_utt_emo_prediction_layers: Linear(192->128) split into utt/know halves, Linear(128->7)
    w_h1 = nrm(ks[13], (HIDDEN + COMET, HIDDEN))
    b_h1 = jnp.zeros((HIDDEN,), jnp.float32)
    w_h2 = nrm(ks[14], (HIDDEN, NUM_CLASS))
    w_h2_pad = jnp.zeros((HIDDEN, HIDDEN), jnp.float32).at[:, :NUM_CLASS].set(w_h2)
    b_h2_pad = jnp.zeros((HIDDEN,), jnp.float32)

    # ---- packed slabs consumed by the fused kernel (few large DMAs instead of ~25 tiny ones) ----
    w_qkv = jnp.concatenate([wq, wk, wv], axis=1)                              # [H, 3H]
    p["w128"] = jnp.concatenate(
        [w_qkv, wo, w_adapt0, w_h1[:HIDDEN], w_h2_pad], axis=1)                # [H, 7H]
    w_adapt12 = jnp.concatenate([w_adapt1, w_adapt2], axis=1)                  # [L, 2L] = [64,128]
    p["w64"] = jnp.concatenate([w_adapt12, w_h1[HIDDEN:]], axis=1)             # [L, 2H] = [64,256]
    bias = jnp.zeros((8, HIDDEN), jnp.float32)
    bias = bias.at[0].set(bo).at[1].set(b_adapt0)
    bias = bias.at[2, :COMET].set(b_adapt1).at[2, COMET:2 * COMET].set(b_adapt2)
    bias = bias.at[3].set(b_h1).at[4].set(b_h2_pad)
    p["bias"] = bias
    return p


if __name__ == "__main__":
    key = jax.random.PRNGKey(0)
    k_param, k_in, k_comet = jax.random.split(key, 3)

    params = init_params(k_param)

    inputs = jax.random.randint(k_in, (B * WIN, SEQ), 0, VOCAB, dtype=jnp.int32)
    mask = jnp.ones((B * WIN, SEQ), jnp.float32).at[:, SEQ - 2:].set(0.0)
    comet_inputs = jax.random.normal(k_comet, (B, WIN, NUM_COMET_REL, COMET), jnp.float32)
    comet_mask = jnp.ones((B, WIN), jnp.float32)

    logits, latent_params = graph_erc_forward(params, inputs, mask, comet_inputs, comet_mask)
    logits = jax.block_until_ready(logits)
    assert logits.shape == (B, NUM_CLASS)
    assert bool(jnp.all(jnp.isfinite(logits)))
    print("KERNEL_OK")
</pallas_src>

<mosaic_0001>
module attributes {stable_mosaic.version = 11 : i64} {
  func.func @graph_erc_kernel(%arg0: memref<64x128xf32, #tpu.memory_space<vmem>>, %arg1: memref<8x64xf32, #tpu.memory_space<vmem>>, %arg2: memref<8x128xf32, #tpu.memory_space<vmem>>, %arg3: memref<80x64xf32, #tpu.memory_space<vmem>>, %arg4: memref<128x896xf32, #tpu.memory_space<vmem>>, %arg5: memref<64x256xf32, #tpu.memory_space<vmem>>, %arg6: memref<8x128xf32, #tpu.memory_space<vmem>>, %arg7: memref<2x128xf32, #tpu.memory_space<vmem>>) attributes {dimension_semantics = [], scalar_prefetch = 0 : i64, scratch_operands = 0 : i64, tpu.core_type = #tpu.core_type<tc>} {
    %c0 = arith.constant 0 : index
    %c0_0 = arith.constant 0 : index
    %0 = vector.load %arg0[%c0, %c0_0] : memref<64x128xf32, #tpu.memory_space<vmem>>, vector<64x128xf32>
    %c0_1 = arith.constant 0 : index
    %c0_2 = arith.constant 0 : index
    %1 = vector.load %arg4[%c0_1, %c0_2] : memref<128x896xf32, #tpu.memory_space<vmem>>, vector<128x896xf32>
    %c0_3 = arith.constant 0 : index
    %c0_4 = arith.constant 0 : index
    %2 = vector.load %arg5[%c0_3, %c0_4] : memref<64x256xf32, #tpu.memory_space<vmem>>, vector<64x256xf32>
    %c0_5 = arith.constant 0 : index
    %c0_6 = arith.constant 0 : index
    %3 = vector.load %arg6[%c0_5, %c0_6] : memref<8x128xf32, #tpu.memory_space<vmem>>, vector<8x128xf32>
    %4 = vector.extract_strided_slice %1 {offsets = [0, 0], sizes = [128, 384], strides = [1, 1]} : vector<128x896xf32> to vector<128x384xf32>
    %cst = arith.constant dense<0.000000e+00> : vector<64x384xf32>
    %5 = tpu.matmul %0, %4, %cst {dimension_numbers = #tpu.dot_dimension_numbers<[1], [0], [0], [1], [0, 0, 1, 1], [], []>} : vector<64x128xf32>, vector<128x384xf32>, vector<64x384xf32> -> vector<64x384xf32>
    %6 = vector.extract_strided_slice %5 {offsets = [0, 128], sizes = [64, 128], strides = [1, 1]} : vector<64x384xf32> to vector<64x128xf32>
    %7 = vector.extract_strided_slice %5 {offsets = [0, 256], sizes = [64, 128], strides = [1, 1]} : vector<64x384xf32> to vector<64x128xf32>
    %8 = vector.shape_cast %0 : vector<64x128xf32> to vector<8x8x128xf32>
    %9 = vector.extract_strided_slice %8 {offsets = [0, 0, 0], sizes = [8, 1, 128], strides = [1, 1, 1]} : vector<8x8x128xf32> to vector<8x1x128xf32>
    %10 = vector.shape_cast %9 : vector<8x1x128xf32> to vector<8x128xf32>
    %11 = vector.shape_cast %5 : vector<64x384xf32> to vector<8x8x384xf32>
    %12 = vector.extract_strided_slice %11 {offsets = [0, 0, 0], sizes = [8, 1, 128], strides = [1, 1, 1]} : vector<8x8x384xf32> to vector<8x1x128xf32>
    %13 = vector.shape_cast %12 : vector<8x1x128xf32> to vector<8x128xf32>
    %cst_7 = arith.constant dense<0.000000e+00> : vector<8x64xf32>
    %14 = tpu.matmul %13, %6, %cst_7 {dimension_numbers = #tpu.dot_dimension_numbers<[1], [1], [0], [0], [0, 0, 1, 0], [], []>} : vector<8x128xf32>, vector<64x128xf32>, vector<8x64xf32> -> vector<8x64xf32>
    %cst_8 = arith.constant 0.0883883461 : f32
    %15 = vector.broadcast %cst_8 : f32 to vector<8x64xf32>
    %16 = arith.mulf %14, %15 : vector<8x64xf32>
    %c0_9 = arith.constant 0 : index
    %c0_10 = arith.constant 0 : index
    %17 = vector.load %arg1[%c0_9, %c0_10] : memref<8x64xf32, #tpu.memory_space<vmem>>, vector<8x64xf32>
    %18 = arith.addf %16, %17 : vector<8x64xf32>
    %cst_11 = arith.constant dense<0xFF800000> : vector<8xf32>
    %19 = vector.multi_reduction <maximumf>, %18, %cst_11 [1] : vector<8x64xf32> to vector<8xf32>
    %20 = vector.shape_cast %19 : vector<8xf32> to vector<8x1xf32>
    %21 = vector.broadcast %20 : vector<8x1xf32> to vector<8x64xf32>
    %22 = arith.subf %18, %21 : vector<8x64xf32>
    %23 = math.exp %22 : vector<8x64xf32>
    %cst_12 = arith.constant dense<0.000000e+00> : vector<8xf32>
    %24 = vector.multi_reduction <add>, %23, %cst_12 [1] : vector<8x64xf32> to vector<8xf32>
    %25 = vector.shape_cast %24 : vector<8xf32> to vector<8x1xf32>
    %26 = tpu.reciprocal %25 {approx = true} : vector<8x1xf32> -> vector<8x1xf32>
    %27 = vector.broadcast %26 : vector<8x1xf32> to vector<8x64xf32>
    %28 = arith.mulf %23, %27 : vector<8x64xf32>
    %cst_13 = arith.constant dense<0.000000e+00> : vector<8x128xf32>
    %29 = tpu.matmul %28, %7, %cst_13 {dimension_numbers = #tpu.dot_dimension_numbers<[1], [0], [0], [1], [0, 0, 1, 1], [], []>} : vector<8x64xf32>, vector<64x128xf32>, vector<8x128xf32> -> vector<8x128xf32>
    %30 = arith.addf %10, %29 : vector<8x128xf32>
    %31 = vector.extract_strided_slice %1 {offsets = [0, 384], sizes = [128, 128], strides = [1, 1]} : vector<128x896xf32> to vector<128x128xf32>
    %cst_14 = arith.constant dense<0.000000e+00> : vector<8x128xf32>
    %32 = tpu.matmul %30, %31, %cst_14 {dimension_numbers = #tpu.dot_dimension_numbers<[1], [0], [0], [1], [0, 0, 1, 1], [], []>} : vector<8x128xf32>, vector<128x128xf32>, vector<8x128xf32> -> vector<8x128xf32>
    %33 = vector.extract_strided_slice %3 {offsets = [0, 0], sizes = [1, 128], strides = [1, 1]} : vector<8x128xf32> to vector<1x128xf32>
    %34 = vector.broadcast %33 : vector<1x128xf32> to vector<8x128xf32>
    %35 = arith.addf %32, %34 : vector<8x128xf32>
    %36 = math.tanh %35 : vector<8x128xf32>
    %c0_15 = arith.constant 0 : index
    %c0_16 = arith.constant 0 : index
    %37 = vector.load %arg2[%c0_15, %c0_16] : memref<8x128xf32, #tpu.memory_space<vmem>>, vector<8x128xf32>
    %38 = arith.addf %36, %37 : vector<8x128xf32>
    %39 = vector.extract_strided_slice %1 {offsets = [0, 512], sizes = [128, 128], strides = [1, 1]} : vector<128x896xf32> to vector<128x128xf32>
    %cst_17 = arith.constant dense<0.000000e+00> : vector<8x128xf32>
    %40 = tpu.matmul %38, %39, %cst_17 {dimension_numbers = #tpu.dot_dimension_numbers<[1], [0], [0], [1], [0, 0, 1, 1], [], []>} : vector<8x128xf32>, vector<128x128xf32>, vector<8x128xf32> -> vector<8x128xf32>
    %41 = vector.extract_strided_slice %3 {offsets = [1, 0], sizes = [1, 128], strides = [1, 1]} : vector<8x128xf32> to vector<1x128xf32>
    %42 = vector.broadcast %41 : vector<1x128xf32> to vector<8x128xf32>
    %43 = arith.addf %40, %42 : vector<8x128xf32>
    %44 = math.tanh %43 : vector<8x128xf32>
    %c0_18 = arith.constant 0 : index
    %c0_19 = arith.constant 0 : index
    %45 = vector.load %arg3[%c0_18, %c0_19] : memref<80x64xf32, #tpu.memory_space<vmem>>, vector<80x64xf32>
    %46 = vector.extract_strided_slice %2 {offsets = [0, 0], sizes = [64, 128], strides = [1, 1]} : vector<64x256xf32> to vector<64x128xf32>
    %cst_20 = arith.constant dense<0.000000e+00> : vector<80x128xf32>
    %47 = tpu.matmul %45, %46, %cst_20 {dimension_numbers = #tpu.dot_dimension_numbers<[1], [0], [0], [1], [0, 0, 1, 1], [], []>} : vector<80x64xf32>, vector<64x128xf32>, vector<80x128xf32> -> vector<80x128xf32>
    %48 = vector.extract_strided_slice %3 {offsets = [2, 0], sizes = [1, 128], strides = [1, 1]} : vector<8x128xf32> to vector<1x128xf32>
    %49 = vector.broadcast %48 : vector<1x128xf32> to vector<80x128xf32>
    %50 = arith.addf %47, %49 : vector<80x128xf32>
    %51 = math.tanh %50 : vector<80x128xf32>
    %52 = vector.extract_strided_slice %44 {offsets = [3, 0], sizes = [1, 128], strides = [1, 1]} : vector<8x128xf32> to vector<1x128xf32>
    %53 = vector.extract_strided_slice %44 {offsets = [7, 0], sizes = [1, 128], strides = [1, 1]} : vector<8x128xf32> to vector<1x128xf32>
    %54 = tpu.concatenate %52, %53 in 0 : vector<1x128xf32>, vector<1x128xf32> -> vector<2x128xf32>
    %55 = vector.extract_strided_slice %51 {offsets = [3, 0], sizes = [1, 64], strides = [1, 1]} : vector<80x128xf32> to vector<1x64xf32>
    %56 = vector.extract_strided_slice %51 {offsets = [7, 0], sizes = [1, 64], strides = [1, 1]} : vector<80x128xf32> to vector<1x64xf32>
    %57 = tpu.concatenate %55, %56 in 0 : vector<1x64xf32>, vector<1x64xf32> -> vector<2x64xf32>
    %58 = vector.extract_strided_slice %1 {offsets = [0, 640], sizes = [128, 128], strides = [1, 1]} : vector<128x896xf32> to vector<128x128xf32>
    %cst_21 = arith.constant dense<0.000000e+00> : vector<2x128xf32>
    %59 = tpu.matmul %54, %58, %cst_21 {dimension_numbers = #tpu.dot_dimension_numbers<[1], [0], [0], [1], [0, 0, 1, 1], [], []>} : vector<2x128xf32>, vector<128x128xf32>, vector<2x128xf32> -> vector<2x128xf32>
    %60 = vector.extract_strided_slice %2 {offsets = [0, 128], sizes = [64, 128], strides = [1, 1]} : vector<64x256xf32> to vector<64x128xf32>
    %cst_22 = arith.constant dense<0.000000e+00> : vector<2x128xf32>
    %61 = tpu.matmul %57, %60, %cst_22 {dimension_numbers = #tpu.dot_dimension_numbers<[1], [0], [0], [1], [0, 0, 1, 1], [], []>} : vector<2x64xf32>, vector<64x128xf32>, vector<2x128xf32> -> vector<2x128xf32>
    %62 = arith.addf %59, %61 : vector<2x128xf32>
    %63 = vector.extract_strided_slice %3 {offsets = [3, 0], sizes = [1, 128], strides = [1, 1]} : vector<8x128xf32> to vector<1x128xf32>
    %64 = vector.broadcast %63 : vector<1x128xf32> to vector<2x128xf32>
    %65 = arith.addf %62, %64 : vector<2x128xf32>
    %66 = math.tanh %65 : vector<2x128xf32>
    %67 = vector.extract_strided_slice %1 {offsets = [0, 768], sizes = [128, 128], strides = [1, 1]} : vector<128x896xf32> to vector<128x128xf32>
    %cst_23 = arith.constant dense<0.000000e+00> : vector<2x128xf32>
    %68 = tpu.matmul %66, %67, %cst_23 {dimension_numbers = #tpu.dot_dimension_numbers<[1], [0], [0], [1], [0, 0, 1, 1], [], []>} : vector<2x128xf32>, vector<128x128xf32>, vector<2x128xf32> -> vector<2x128xf32>
    %69 = vector.extract_strided_slice %3 {offsets = [4, 0], sizes = [1, 128], strides = [1, 1]} : vector<8x128xf32> to vector<1x128xf32>
    %70 = vector.broadcast %69 : vector<1x128xf32> to vector<2x128xf32>
    %71 = arith.addf %68, %70 : vector<2x128xf32>
    %c0_24 = arith.constant 0 : index
    %c0_25 = arith.constant 0 : index
    %72 = vector.load %arg7[%c0_24, %c0_25] : memref<2x128xf32, #tpu.memory_space<vmem>>, vector<2x128xf32>
    tpu.vector_store %arg7[%c0_24, %c0_25], %71 {strides = array<i32>} : memref<2x128xf32, #tpu.memory_space<vmem>>, vector<2x128xf32>,
    return
  }
}

</mosaic_0001>

<bundles_post_ra>
// kernel: tpu_custom_call.1
= control target key start
LH: loop header
LB: loop body
LE: loop exit
PB: predicated region body
PF: predicated region fallthrough
CT: control target
= control target key end

     0   :  { %12 = vsyncpa [#allocation3], 0  ;;  %s2048_s0 = inlined_call_operand.hbm [shape: f32[64,128], index: 0, kind: input, shape index: {}]   ;;  %s2049_s1 = inlined_call_operand.vmem [shape: f32[8,64], index: 1, kind: input, shape index: {}]   ;;  %s2050_s2 = inlined_call_operand.vmem [shape: f32[8,128], index: 2, kind: input, shape index: {}]   ;;  %s2051_s3 = inlined_call_operand.vmem [shape: f32[80,64], index: 3, kind: input, shape index: {}]   ;;  %s2052_s4 = inlined_call_operand.hbm [shape: f32[128,896], index: 4, kind: input, shape index: {}]   ;;  %s2053_s5 = inlined_call_operand.vmem [shape: f32[64,256], index: 5, kind: input, shape index: {}]   ;;  %s2054_s6 = inlined_call_operand.vmem [shape: f32[8,128], index: 6, kind: input, shape index: {}]   ;;  %s2055_s7 = inlined_call_operand.hbm [shape: f32[2,128], index: 7, kind: output, shape index: {}]  }
   0x1   :  { %13 = vsyncpa [#allocation6], 0 }
   0x2   :  { %14 = vsyncpa [#allocation4], 0  ;;  %s1709_s24 = smov [#allocation2]  }
   0x3   :  { %s20_s25 = sshll.u32 %s1709_s24, 4  ;;  %s21_s25 = int_to_ptr.vmem [resolvable:$true] %s20_s25 }
   0x4   :  { %s1651_s26 = scalar_lea.vmem %s21_s25, 1024  ;;  %p1656_p1 = scmp.lt.s32.totalorder %s21_s25, %s21_s25 }
   0x5   :  { %p1652_p0 = scmp.ne.s32.totalorder %s21_s25, %s1651_s26  ;;  %p1657_p2 = scmp.lt.s32.totalorder %s1651_s26, %s1651_s26 }
   0x7   :  { %p1658_p3 = por %p1657_p2, %p1656_p1 }
   0x9   :  { %p1659_p4 = pnand %p1658_p3, %p1652_p0 }
   0xb   :  { %1662 = shalt.err (!%p1659_p4)
}
   0xc   :  { %s1710_s27 = smov 128   ;;  %s1711_s28 = smov 8  }
   0xd   :  { %26 = dma.hbm_to_vmem [thread:$0]  %s2048_s0, 1024, %s21_s25, [#allocation3], %s1710_s27, %s1710_s27, %s1711_s28  }
   0xe   :  { %s1712_s8 = smov [#allocation5]  }
   0xf   :  { %s38_s9 = sshll.u32 %s1712_s8, 4  ;;  %s39_s9 = int_to_ptr.vmem [resolvable:$true] %s38_s9 }
  0x10   :  { %s1671_s10 = scalar_lea.vmem %s39_s9, 14336  ;;  %p1676_p6 = scmp.lt.s32.totalorder %s39_s9, %s39_s9 }
  0x11   :  { %p1672_p5 = scmp.ne.s32.totalorder %s39_s9, %s1671_s10  ;;  %p1677_p7 = scmp.lt.s32.totalorder %s1671_s10, %s1671_s10 }
  0x13   :  { %p1678_p8 = por %p1677_p7, %p1676_p6 }
  0x15   :  { %p1679_p9 = pnand %p1678_p8, %p1672_p5 }
  0x17   :  { %1682 = shalt.err (!%p1679_p9)
}
  0x18   :  { %s1713_s11 = smov 896   ;;  %s1714_s12 = smov 56  }
  0x19   :  { %44 = dma.hbm_to_vmem [thread:$0]  %s2052_s4, 14336, %s39_s9, [#allocation6], %s1713_s11, %s1713_s11, %s1714_s12  }
  0x1a   :  { %1703 = dma.done.wait [#allocation3], 1024  }
  0x1b   :  { %1704 = vsyncadd [#allocation3], 4294966272 }
  0x1c   :  { %1705 = dma.done.wait [#allocation6], 14336  }
  0x1d   :  { %1706 = vsyncadd [#allocation6], 4294952960  ;;  %v1715_v0 = vmov 0.0   ;;  %v169_v1 = vld [vmem:[#allocation5 + $0x350] sm:$0xff]  ;;  %v168_v2 = vld [vmem:[#allocation5 + $0x348] sm:$0xff]  ;;  %vm1716_vm0 = vmmov 0  }
  0x1e   :  { %256 = vmatprep.mubr.f32.mxu0 %v1715_v0  ;;  %v162_v3 = vld [vmem:[#allocation5 + $0x318] sm:$0xff]  ;;  %192 = vmatprep.subr.mxu0 %v169_v1  ;;  %v161_v4 = vld [vmem:[#allocation5 + $0x310] sm:$0xff]  ;;  %v155_v5 = vld [vmem:[#allocation5 + $0x2e0] sm:$0xff]  ;;  %vm419_vm1 = vcmask 1041409   ;;  %vm422_vm2 = vcmask 1042434   ;;  %vm425_vm3 = vcmask 1043459  }
  0x1f   :  { %193 = vmatpush1.msra.mxu0 %v168_v2  ;;  %v154_v6 = vld [vmem:[#allocation5 + $0x2d8] sm:$0xff]  ;;  %v148_v7 = vld [vmem:[#allocation5 + $0x2a8] sm:$0xff]  ;;  %v147_v8 = vld [vmem:[#allocation5 + $0x2a0] sm:$0xff]  ;;  %vm428_vm4 = vcmask 1044484   ;;  %vm431_vm5 = vcmask 1045509   ;;  %vm434_vm6 = vcmask 1046534  }
  0x20   :  { %194 = vmatprep.subr.mxu0 %v162_v3  ;;  %v141_v9 = vld [vmem:[#allocation5 + $0x270] sm:$0xff]  ;;  %v140_v10 = vld [vmem:[#allocation5 + $0x268] sm:$0xff]  ;;  %v134_v11 = vld [vmem:[#allocation5 + $0x238] sm:$0xff]  ;;  %vm437_vm7 = vcmask 1047559   ;;  %vm513_vm8 = vcmask 523264   ;;  %vm953_vm9 = vcmask 1040384  }
  0x21   :  { %195 = vmatpush1.msra.mxu0 %v161_v4  ;;  %v133_v12 = vld [vmem:[#allocation5 + $0x230] sm:$0xff]  ;;  %v127_v13 = vld [vmem:[#allocation5 + $0x200] sm:$0xff]  ;;  %v126_v15 = vld [vmem:[#allocation5 + $0x1f8] sm:$0xff] }
  0x22   :  { %196 = vmatprep.subr.mxu0 %v155_v5  ;;  %v1765_v14 = vld [vmem:[#allocation2] sm:$0xff]  ;;  %v120_v16 = vld [vmem:[#allocation5 + $0x1c8] sm:$0xff]  ;;  %v113_v18 = vld [vmem:[#allocation5 + $0x190] sm:$0xff] }
  0x23   :  { %197 = vmatpush1.msra.mxu0 %v154_v6  ;;  %1382 = vmatprep.mubr.f32.mxu1 %v1765_v14  ;;  %v119_v17 = vld [vmem:[#allocation5 + $0x1c0] sm:$0xff]  ;;  %v112_v19 = vld [vmem:[#allocation5 + $0x188] sm:$0xff]  ;;  %v106_v20 = vld [vmem:[#allocation5 + $0x158] sm:$0xff] }
  0x24   :  { %198 = vmatprep.subr.mxu0 %v148_v7  ;;  %v105_v21 = vld [vmem:[#allocation5 + $0x150] sm:$0xff]  ;;  %v99_v22 = vld [vmem:[#allocation5 + $0x120] sm:$0xff]  ;;  %v98_v23 = vld [vmem:[#allocation5 + $0x118] sm:$0xff] }
  0x25   :  { %199 = vmatpush1.msra.mxu0 %v147_v8  ;;  %v92_v24 = vld [vmem:[#allocation5 + $0xe8] sm:$0xff]  ;;  %v91_v25 = vld [vmem:[#allocation5 + $0xe0] sm:$0xff]  ;;  %v85_v26 = vld [vmem:[#allocation5 + $0xb0] sm:$0xff] }
  0x26   :  { %200 = vmatprep.subr.mxu0 %v141_v9  ;;  %v84_v27 = vld [vmem:[#allocation5 + $0xa8] sm:$0xff]  ;;  %v78_v28 = vld [vmem:[#allocation5 + $0x78] sm:$0xff]  ;;  %v77_v29 = vld [vmem:[#allocation5 + $0x70] sm:$0xff] }
  0x27   :  { %201 = vmatpush1.msra.mxu0 %v140_v10  ;;  %v71_v30 = vld [vmem:[#allocation5 + $0x40] sm:$0xff]  ;;  %v70_v31 = vld [vmem:[#allocation5 + $0x38] sm:$0xff]  ;;  %v64_v32 = vld [vmem:[#allocation5 + $0x8] sm:$0xff] }
  0x28   :  { %202 = vmatprep.subr.mxu0 %v134_v11  ;;  %v63_v33 = vld [vmem:[#allocation5] sm:$0xff]  ;;  %v1771_v34 = vld [vmem:[#allocation2 + $0x8] sm:$0xff]  ;;  %v1775_v35 = vld [vmem:[#allocation2 + $0x10] sm:$0xff] }
  0x29   :  { %203 = vmatpush1.msra.mxu0 %v133_v12  ;;  %v1779_v36 = vld [vmem:[#allocation2 + $0x18] sm:$0xff]  ;;  %v1783_v37 = vld [vmem:[#allocation2 + $0x20] sm:$0xff]  ;;  %v1787_v38 = vld [vmem:[#allocation2 + $0x28] sm:$0xff] }
  0x2a   :  { %204 = vmatprep.subr.mxu0 %v127_v13  ;;  %v1791_v39 = vld [vmem:[#allocation2 + $0x30] sm:$0xff]  ;;  %v1795_v40 = vld [vmem:[#allocation2 + $0x38] sm:$0xff]  ;;  %v163_v9 = vld [vmem:[#allocation5 + $0x320] sm:$0xff] }
  0x2b   :  { %205 = vmatpush1.msra.mxu0 %v126_v15  ;;  %v170_v8 = vld [vmem:[#allocation5 + $0x358] sm:$0xff]  ;;  %v156_v10 = vld [vmem:[#allocation5 + $0x2e8] sm:$0xff]  ;;  %v149_v11 = vld [vmem:[#allocation5 + $0x2b0] sm:$0xff] }
  0x2c   :  { %206 = vmatprep.subr.mxu0 %v120_v16  ;;  %1350 = vmatprep.subr.mxu1 %v170_v8  ;;  %v142_v12 = vld [vmem:[#allocation5 + $0x278] sm:$0xff]  ;;  %v135_v13 = vld [vmem:[#allocation5 + $0x240] sm:$0xff]  ;;  %v128_v15 = vld [vmem:[#allocation5 + $0x208] sm:$0xff] }
  0x2d   :  { %207 = vmatpush1.msra.mxu0 %v119_v17  ;;  %1351 = vmatpush3.msra.mxu1 %v170_v8  ;;  %v121_v16 = vld [vmem:[#allocation5 + $0x1d0] sm:$0xff]  ;;  %v114_v17 = vld [vmem:[#allocation5 + $0x198] sm:$0xff] }
  0x2e   :  { %208 = vmatprep.subr.mxu0 %v113_v18  ;;  %1352 = vmatprep.subr.mxu1 %v163_v9  ;;  %v107_v18 = vld [vmem:[#allocation5 + $0x160] sm:$0xff]  ;;  %v165_v8 = vld [vmem:[#allocation5 + $0x330] sm:$0xff] }
  0x2f   :  { %209 = vmatpush1.msra.mxu0 %v112_v19  ;;  %1353 = vmatpush3.msra.mxu1 %v163_v9  ;;  %v100_v19 = vld [vmem:[#allocation5 + $0x128] sm:$0xff]  ;;  %v158_v9 = vld [vmem:[#allocation5 + $0x2f8] sm:$0xff] }
  0x30   :  { %210 = vmatprep.subr.mxu0 %v106_v20  ;;  %1354 = vmatprep.subr.mxu1 %v156_v10  ;;  %v93_v20 = vld [vmem:[#allocation5 + $0xf0] sm:$0xff] }
  0x31   :  { %211 = vmatpush1.msra.mxu0 %v105_v21  ;;  %1355 = vmatpush3.msra.mxu1 %v156_v10  ;;  %v86_v21 = vld [vmem:[#allocation5 + $0xb8] sm:$0xff]  ;;  %v189_v10 = vld [vmem:[%s2053_s5 + $0x70] sm:$0xff] }
  0x32   :  { %212 = vmatprep.subr.mxu0 %v99_v22  ;;  %1356 = vmatprep.subr.mxu1 %v149_v11  ;;  %v79_v22 = vld [vmem:[#allocation5 + $0x80] sm:$0xff] }
  0x33   :  { %213 = vmatpush1.msra.mxu0 %v98_v23  ;;  %1357 = vmatpush3.msra.mxu1 %v149_v11  ;;  %v72_v23 = vld [vmem:[#allocation5 + $0x48] sm:$0xff]  ;;  %v151_v11 = vld [vmem:[#allocation5 + $0x2c0] sm:$0xff] }
  0x34   :  { %214 = vmatprep.subr.mxu0 %v92_v24  ;;  %1358 = vmatprep.subr.mxu1 %v142_v12  ;;  %v65_v24 = vld [vmem:[#allocation5 + $0x10] sm:$0xff] }
  0x35   :  { %215 = vmatpush1.msra.mxu0 %v91_v25  ;;  %1359 = vmatpush3.msra.mxu1 %v142_v12  ;;  %v144_v12 = vld [vmem:[#allocation5 + $0x288] sm:$0xff] }
  0x36   :  { %216 = vmatprep.subr.mxu0 %v85_v26  ;;  %1360 = vmatprep.subr.mxu1 %v135_v13  ;;  %v511_v26 = vld [vmem:[%s2049_s1] sm:$0xff] }
  0x37   :  { %217 = vmatpush1.msra.mxu0 %v84_v27  ;;  %1361 = vmatpush3.msra.mxu1 %v135_v13  ;;  %v137_v13 = vld [vmem:[#allocation5 + $0x250] sm:$0xff] }
  0x38   :  { %218 = vmatprep.subr.mxu0 %v78_v28  ;;  %1362 = vmatprep.subr.mxu1 %v128_v15 }
  0x39   :  { %219 = vmatpush1.msra.mxu0 %v77_v29  ;;  %1363 = vmatpush3.msra.mxu1 %v128_v15 }
  0x3a   :  { %220 = vmatprep.subr.mxu0 %v71_v30  ;;  %1364 = vmatprep.subr.mxu1 %v121_v16 }
  0x3b   :  { %221 = vmatpush1.msra.mxu0 %v70_v31  ;;  %1365 = vmatpush3.msra.mxu1 %v121_v16 }
  0x3c   :  { %222 = vmatprep.subr.mxu0 %v64_v32  ;;  %1366 = vmatprep.subr.mxu1 %v114_v17 }
  0x3d   :  { %223 = vmatpush1.msra.mxu0 %v63_v33  ;;  %1367 = vmatpush3.msra.mxu1 %v114_v17 }
  0x3e   :  { %257 = vmatmul.mubr.f32.vlgmr.msra.gmra.mxu0 %v1765_v14  ;;  %1394 = vmatprep.subr.mxu0 %v1715_v0 }
  0x3f   :  { %262 = vmatprep.mubr.f32.mxu0 %v1715_v0  ;;  %1368 = vmatprep.subr.mxu1 %v107_v18 }
  0x40   :  { %1369 = vmatpush3.msra.mxu1 %v107_v18 }
  0x41   :  { %1370 = vmatprep.subr.mxu1 %v100_v19 }
  0x42   :  { %263 = vmatmul.mubr.f32.gmra.mxu0 %v1771_v34  ;;  %1371 = vmatpush3.msra.mxu1 %v100_v19 }
  0x43   :  { %268 = vmatprep.mubr.f32.mxu0 %v1715_v0  ;;  %1372 = vmatprep.subr.mxu1 %v93_v20 }
  0x44   :  { %1373 = vmatpush3.msra.mxu1 %v93_v20 }
  0x45   :  { %1374 = vmatprep.subr.mxu1 %v86_v21 }
  0x46   :  { %269 = vmatmul.mubr.f32.gmra.mxu0 %v1775_v35  ;;  %1375 = vmatpush3.msra.mxu1 %v86_v21 }
  0x47   :  { %274 = vmatprep.mubr.f32.mxu0 %v1715_v0  ;;  %1376 = vmatprep.subr.mxu1 %v79_v22 }
  0x48   :  { %1377 = vmatpush3.msra.mxu1 %v79_v22 }
  0x49   :  { %1378 = vmatprep.subr.mxu1 %v72_v23 }
  0x4a   :  { %275 = vmatmul.mubr.f32.gmra.mxu0 %v1779_v36  ;;  %1379 = vmatpush3.msra.mxu1 %v72_v23 }
  0x4b   :  { %280 = vmatprep.mubr.f32.mxu0 %v1715_v0  ;;  %1380 = vmatprep.subr.mxu1 %v65_v24 }
  0x4c   :  { %1381 = vmatpush3.msra.mxu1 %v65_v24 }
  0x4d   :  { %1383 = vmatmul.mubr.f32.vlgmr.msra.gmra.mxu1 %v1771_v34  ;;  %1413 = vmatprep.subr.mxu1 %v1715_v0 }
  0x4e   :  { %281 = vmatmul.mubr.f32.gmra.mxu0 %v1783_v37  ;;  %1385 = vmatprep.mubr.f32.mxu1 %v1775_v35 }
  0x4f   :  { %286 = vmatprep.mubr.f32.mxu0 %v1715_v0 }
  0x51   :  { %1386 = vmatmul.mubr.f32.gmra.mxu1 %v1779_v36 }
  0x52   :  { %287 = vmatmul.mubr.f32.gmra.mxu0 %v1787_v38  ;;  %1388 = vmatprep.mubr.f32.mxu1 %v1783_v37 }
  0x53   :  { %292 = vmatprep.mubr.f32.mxu0 %v1715_v0 }
  0x55   :  { %1389 = vmatmul.mubr.f32.gmra.mxu1 %v1787_v38 }
  0x56   :  { %293 = vmatmul.mubr.f32.gmra.mxu0 %v1791_v39  ;;  %1391 = vmatprep.mubr.f32.mxu1 %v1791_v39 }
  0x57   :  { %298 = vmatprep.mubr.f32.mxu0 %v1715_v0 }
  0x59   :  { %1392 = vmatmul.mubr.f32.gmra.mxu1 %v1795_v40 }
  0x5a   :  { %299 = vmatmul.mubr.f32.gmra.mxu0 %v1795_v40  ;;  %1429 = vmatprep.mubr.msk.f32.mxu1 %vm1716_vm0, %v1715_v0 }
  0x5b   :  { %1410 = vmatprep.mubr.msk.f32.mxu0 %vm1716_vm0, %v1715_v0 }
  0xfe   :  { %v258_v41 = vpop.f32.mrf.mxu0 }
 0x100   :  { %v260_v42 = vpop.f32.mrf.mxu0 }
 0x102   :  { %v264_v43 = vpop.f32.mrf.mxu0 }
 0x103   :  { %v418_v57 = vrot.slane %v264_v43, 7 }
 0x104   :  { %v266_v44 = vpop.f32.mrf.mxu0 }
 0x105   :  { %v420_v61 = vsel %vm419_vm1, %v418_v57, %v258_v41  ;;  %v150_v57 = vld [vmem:[#allocation5 + $0x2b8] sm:$0xff] }
 0x106   :  { %v270_v45 = vpop.f32.mrf.mxu0 }
 0x107   :  { %v421_v58 = vrot.slane %v270_v45, 6 }
 0x108   :  { %v272_v46 = vpop.f32.mrf.mxu0 }
 0x109   :  { %v423_v63 = vsel %vm422_vm2, %v421_v58, %v420_v61  ;;  %v143_v58 = vld [vmem:[#allocation5 + $0x280] sm:$0xff]  ;;  %v122_v61 = vld [vmem:[#allocation5 + $0x1d8] sm:$0xff] }
 0x10a   :  { %v276_v47 = vpop.f32.mrf.mxu0 }
 0x10b   :  { %v424_v59 = vrot.slane %v276_v47, 5 }
 0x10c   :  { %v278_v48 = vpop.f32.mrf.mxu0 }
 0x10d   :  { %v426_v2 = vsel %vm425_vm3, %v424_v59, %v423_v63  ;;  %v1384_v31 = vpop.f32.mrf.mxu1  ;;  %v136_v59 = vld [vmem:[#allocation5 + $0x248] sm:$0xff] }
 0x10e   :  { %v282_v49 = vpop.f32.mrf.mxu0  ;;  %v108_v63 = vld [vmem:[#allocation5 + $0x168] sm:$0xff] }
 0x10f   :  { %v427_v60 = vrot.slane %v282_v49, 4  ;;  %v371_v32 = vpop.f32.mrf.mxu1 }
 0x110   :  { %v284_v50 = vpop.f32.mrf.mxu0 }
 0x111   :  { %v429_v4 = vsel %vm428_vm4, %v427_v60, %v426_v2  ;;  %v1387_v33 = vpop.f32.mrf.mxu1  ;;  %v129_v60 = vld [vmem:[#allocation5 + $0x210] sm:$0xff]  ;;  %v94_v2 = vld [vmem:[#allocation5 + $0xf8] sm:$0xff] }
 0x112   :  { %v288_v51 = vpop.f32.mrf.mxu0 }
 0x113   :  { %v430_v62 = vrot.slane %v288_v51, 3  ;;  %v381_v41 = vpop.f32.mrf.mxu1 }
 0x114   :  { %v290_v52 = vpop.f32.mrf.mxu0 }
 0x115   :  { %v432_v5 = vsel %vm431_vm5, %v430_v62, %v429_v4  ;;  %v115_v62 = vld [vmem:[#allocation5 + $0x1a0] sm:$0xff]  ;;  %v80_v4 = vld [vmem:[#allocation5 + $0x88] sm:$0xff] }
 0x116   :  { %v294_v53 = vpop.f32.mrf.mxu0 }
 0x117   :  { %v433_v1 = vrot.slane %v294_v53, 2 }
 0x118   :  { %v296_v54 = vpop.f32.mrf.mxu0 }
 0x119   :  { %v435_v6 = vsel %vm434_vm6, %v433_v1, %v432_v5  ;;  %v101_v1 = vld [vmem:[#allocation5 + $0x130] sm:$0xff] }
 0x11a   :  { %v300_v55 = vpop.f32.mrf.mxu0  ;;  %v73_v5 = vld [vmem:[#allocation5 + $0x50] sm:$0xff] }
 0x11b   :  { %v436_v3 = vrot.slane %v300_v55, 1  ;;  %v164_v55 = vld [vmem:[#allocation5 + $0x328] sm:$0xff] }
 0x11c   :  { %v302_v56 = vpop.f32.mrf.mxu0 }
 0x11d   :  { %1395 = vmatpush3.xpose.msra.mxu0 %v302_v56  ;;  %v438_v7 = vsel %vm437_vm7, %v436_v3, %v435_v6  ;;  %v157_v56 = vld [vmem:[#allocation5 + $0x2f0] sm:$0xff]  ;;  %v87_v3 = vld [vmem:[#allocation5 + $0xc0] sm:$0xff]  ;;  %v66_v6 = vld [vmem:[#allocation5 + $0x18] sm:$0xff] }
 0x11e   :  { %1396 = vmatprep.subr.mxu0 %v1715_v0 }
 0x121   :  { %1397 = vmatpush3.xpose.msra.mxu0 %v296_v54  ;;  %v171_v54 = vld [vmem:[#allocation5 + $0x360] sm:$0xff] }
 0x122   :  { %1398 = vmatprep.subr.mxu0 %v1715_v0 }
 0x125   :  { %1399 = vmatpush3.xpose.msra.mxu0 %v290_v52 }
 0x126   :  { %1400 = vmatprep.subr.mxu0 %v1715_v0 }
 0x129   :  { %1401 = vmatpush3.xpose.msra.mxu0 %v284_v50 }
 0x12a   :  { %1402 = vmatprep.subr.mxu0 %v1715_v0 }
 0x12d   :  { %1403 = vmatpush3.xpose.msra.mxu0 %v278_v48 }
 0x12e   :  { %1404 = vmatprep.subr.mxu0 %v1715_v0 }
 0x131   :  { %1405 = vmatpush3.xpose.msra.mxu0 %v272_v46 }
 0x132   :  { %1406 = vmatprep.subr.mxu0 %v1715_v0 }
 0x135   :  { %1407 = vmatpush3.xpose.msra.mxu0 %v266_v44 }
 0x136   :  { %1408 = vmatprep.subr.mxu0 %v1715_v0 }
 0x139   :  { %1409 = vmatpush3.xpose.msra.mxu0 %v260_v42  ;;  %v1390_v42 = vpop.f32.mrf.mxu1 }
 0x13a   :  { %1467 = vmatprep.subr.mxu0 %v1715_v0 }
 0x13b   :  { %v391_v43 = vpop.f32.mrf.mxu1 }
 0x13c   :  { %1411 = vmatmul.mubr.f32.vlgmr.msra.gmra.mxu0 %v438_v7  ;;  %v172_v7 = vld [vmem:[#allocation5 + $0x368] sm:$0xff] }
 0x13d   :  { %1499 = vmatprep.mubr.msk.f32.mxu0 %vm1716_vm0, %v1715_v0  ;;  %v1393_v44 = vpop.f32.mrf.mxu1  ;;  %1468 = vmatpush3.msra.mxu0 %v172_v7  ;;  %v622_v7 = vlaneseq }
 0x13e   :  { %1414 = vmatpush3.msra.mxu1 %v1393_v44  ;;  %1469 = vmatprep.subr.mxu0 %v1715_v0 }
 0x13f   :  { %v401_v45 = vpop.f32.mrf.mxu1  ;;  %1415 = vmatprep.subr.mxu1 %v1715_v0  ;;  %1470 = vmatpush3.msra.mxu0 %v165_v8  ;;  %v1928_v8 = vshrl.u32 %v622_v7, 7 }
 0x140   :  { %1416 = vmatpush3.msra.mxu1 %v401_v45  ;;  %1471 = vmatprep.subr.mxu0 %v1715_v0 }
 0x141   :  { %1417 = vmatprep.subr.mxu1 %v1715_v0  ;;  %1472 = vmatpush3.msra.mxu0 %v158_v9  ;;  %v624_v9 = vsub.s32 0, %v1928_v8 }
 0x142   :  { %1418 = vmatpush3.msra.mxu1 %v1390_v42  ;;  %1473 = vmatprep.subr.mxu0 %v1715_v0 }
 0x143   :  { %1419 = vmatprep.subr.mxu1 %v1715_v0  ;;  %1474 = vmatpush3.msra.mxu0 %v151_v11 }
 0x144   :  { %1420 = vmatpush3.msra.mxu1 %v391_v43  ;;  %1475 = vmatprep.subr.mxu0 %v1715_v0 }
 0x145   :  { %1421 = vmatprep.subr.mxu1 %v1715_v0  ;;  %1476 = vmatpush3.msra.mxu0 %v144_v12 }
 0x146   :  { %1422 = vmatpush3.msra.mxu1 %v1387_v33  ;;  %1477 = vmatprep.subr.mxu0 %v1715_v0 }
 0x147   :  { %1423 = vmatprep.subr.mxu1 %v1715_v0  ;;  %1478 = vmatpush3.msra.mxu0 %v137_v13 }
 0x148   :  { %1424 = vmatpush3.msra.mxu1 %v381_v41  ;;  %1479 = vmatprep.subr.mxu0 %v1715_v0 }
 0x149   :  { %1425 = vmatprep.subr.mxu1 %v1715_v0 }
 0x14a   :  { %1426 = vmatpush3.msra.mxu1 %v1384_v31 }
 0x14b   :  { %1427 = vmatprep.subr.mxu1 %v1715_v0 }
 0x14c   :  { %1428 = vmatpush3.msra.mxu1 %v371_v32 }
 0x14d   :  { %1432 = vmatprep.subr.mxu1 %v1715_v0 }
 0x1fc   :  { %v506_v25 = vpop.f32.mrf.mxu0 }
 0x1fd   :  { %v510_v27 = vmul.f32 0.088388346, %v506_v25 }
 0x1fe   :  { %v1412_v28 = vpop.f32.mrf.mxu0 }
 0x1ff   :  { %v512_v29 = vadd.f32 %v511_v26, %v510_v27 }
 0x201   :  { %v514_v30 = vsel %vm513_vm8, %v512_v29, -inf }
 0x202   :  { %515 = vmax.xlane.f32.xlu0 %v514_v30 }
 0x28b   :  { %v516_v46 = vpop.xlane.xlu0 %515 }
 0x28c   :  { %v517_v47 = vsub.f32 %v512_v29, %v516_v46  ;;  %v130_v46 = vld [vmem:[#allocation5 + $0x218] sm:$0xff] }
 0x28d   :  { %1480 = vmatpush3.msra.mxu0 %v130_v46 }
 0x28e   :  { %v518_v48 = vmul.f32 1.442695, %v517_v47  ;;  %v185_v47 = vld [vmem:[%s2053_s5 + $0x50] sm:$0xff]  ;;  %1481 = vmatprep.subr.mxu0 %v1715_v0 }
 0x290   :  { %1631 = vpow2.f32 %v518_v48  ;;  %v123_v48 = vld [vmem:[#allocation5 + $0x1e0] sm:$0xff] }
 0x291   :  { %1482 = vmatpush3.msra.mxu0 %v123_v48  ;;  %v82_v48 = vld [vmem:[#allocation5 + $0x98] sm:$0xff] }
 0x292   :  { %1483 = vmatprep.subr.mxu0 %v1715_v0 }
 0x29d   :  { %v1632_v49 = vpop.eup %1631 }
 0x29e   :  { %v520_v50 = vsel %vm513_vm8, %v1632_v49, 0.0 }
 0x29f   :  { %521 = vadd.xlane.f32.xlu0 %v520_v50  ;;  %v183_v50 = vld [vmem:[%s2053_s5 + $0x40] sm:$0xff] }
 0x328   :  { %v522_v51 = vpop.xlane.xlu0 %521 }
 0x329   :  { %1633 = vrcp.f32 %v522_v51  ;;  %v109_v51 = vld [vmem:[#allocation5 + $0x170] sm:$0xff] }
 0x336   :  { %v1634_v52 = vpop.eup %1633 }
 0x337   :  { %v524_v53 = vmul.f32 %v1634_v52, %v1632_v49  ;;  %v116_v49 = vld [vmem:[#allocation5 + $0x1a8] sm:$0xff]  ;;  %v181_v52 = vld [vmem:[%s2053_s5 + $0x30] sm:$0xff] }
 0x338   :  { %1484 = vmatpush3.msra.mxu0 %v116_v49  ;;  %v176_v49 = vld [vmem:[%s2053_s5 + $0x8] sm:$0xff] }
 0x339   :  { %1430 = vmatmul.mubr.msk.f32.vlgmr.msra.gmra.mxu1 %vm513_vm8, %v524_v53  ;;  %v179_v53 = vld [vmem:[%s2053_s5 + $0x20] sm:$0xff]  ;;  %1485 = vmatprep.subr.mxu0 %v1715_v0 }
 0x33a   :  { %1433 = vmatpush3.msra.mxu1 %v171_v54  ;;  %1464 = vmatprep.mubr.msk.f32.mxu1 %vm1716_vm0, %v1715_v0  ;;  %v102_v54 = vld [vmem:[#allocation5 + $0x138] sm:$0xff] }
 0x33b   :  { %1434 = vmatprep.subr.mxu1 %v1715_v0  ;;  %1486 = vmatpush3.msra.mxu0 %v109_v51  ;;  %v75_v51 = vld [vmem:[#allocation5 + $0x60] sm:$0xff] }
 0x33c   :  { %1435 = vmatpush3.msra.mxu1 %v164_v55  ;;  %v177_v55 = vld [vmem:[%s2053_s5 + $0x10] sm:$0xff]  ;;  %1487 = vmatprep.subr.mxu0 %v1715_v0 }
 0x33d   :  { %1436 = vmatprep.subr.mxu1 %v1715_v0  ;;  %1488 = vmatpush3.msra.mxu0 %v102_v54  ;;  %v167_v54 = vld [vmem:[#allocation5 + $0x340] sm:$0xff] }
 0x33e   :  { %1437 = vmatpush3.msra.mxu1 %v157_v56  ;;  %v95_v56 = vld [vmem:[#allocation5 + $0x100] sm:$0xff]  ;;  %1489 = vmatprep.subr.mxu0 %v1715_v0 }
 0x33f   :  { %1438 = vmatprep.subr.mxu1 %v1715_v0  ;;  %1490 = vmatpush3.msra.mxu0 %v95_v56  ;;  %v153_v56 = vld [vmem:[#allocation5 + $0x2d0] sm:$0xff] }
 0x340   :  { %1439 = vmatpush3.msra.mxu1 %v150_v57  ;;  %v175_v57 = vld [vmem:[%s2053_s5] sm:$0xff]  ;;  %1491 = vmatprep.subr.mxu0 %v1715_v0 }
 0x341   :  { %1440 = vmatprep.subr.mxu1 %v1715_v0 }
 0x342   :  { %1441 = vmatpush3.msra.mxu1 %v143_v58  ;;  %v88_v58 = vld [vmem:[#allocation5 + $0xc8] sm:$0xff] }
 0x343   :  { %1442 = vmatprep.subr.mxu1 %v1715_v0  ;;  %1492 = vmatpush3.msra.mxu0 %v88_v58  ;;  %v139_v58 = vld [vmem:[#allocation5 + $0x260] sm:$0xff] }
 0x344   :  { %1443 = vmatpush3.msra.mxu1 %v136_v59  ;;  %v797_v59 = vld [vmem:[%s2051_s3] sm:$0xff]  ;;  %1493 = vmatprep.subr.mxu0 %v1715_v0 }
 0x345   :  { %1444 = vmatprep.subr.mxu1 %v1715_v0 }
 0x346   :  { %1445 = vmatpush3.msra.mxu1 %v129_v60  ;;  %v81_v60 = vld [vmem:[#allocation5 + $0x90] sm:$0xff] }
 0x347   :  { %1446 = vmatprep.subr.mxu1 %v1715_v0  ;;  %1494 = vmatpush3.msra.mxu0 %v81_v60 }
 0x348   :  { %1447 = vmatpush3.msra.mxu1 %v122_v61  ;;  %v798_v61 = vld [vmem:[%s2051_s3 + $0x8] sm:$0xff]  ;;  %1495 = vmatprep.subr.mxu0 %v1715_v0 }
 0x349   :  { %1448 = vmatprep.subr.mxu1 %v1715_v0 }
 0x34a   :  { %1449 = vmatpush3.msra.mxu1 %v115_v62  ;;  %v74_v62 = vld [vmem:[#allocation5 + $0x58] sm:$0xff] }
 0x34b   :  { %1450 = vmatprep.subr.mxu1 %v1715_v0  ;;  %1496 = vmatpush3.msra.mxu0 %v74_v62 }
 0x34c   :  { %1451 = vmatpush3.msra.mxu1 %v108_v63  ;;  %v67_v63 = vld [vmem:[#allocation5 + $0x20] sm:$0xff]  ;;  %1497 = vmatprep.subr.mxu0 %v1715_v0 }
 0x34d   :  { %1452 = vmatprep.subr.mxu1 %v1715_v0  ;;  %1498 = vmatpush3.msra.mxu0 %v67_v63 }
 0x34e   :  { %1453 = vmatpush3.msra.mxu1 %v101_v1  ;;  %v173_v1 = vld [vmem:[#allocation5 + $0x370] sm:$0xff]  ;;  %1533 = vmatprep.subr.mxu0 %v1715_v0 }
 0x34f   :  { %1454 = vmatprep.subr.mxu1 %v1715_v0 }
 0x350   :  { %1455 = vmatpush3.msra.mxu1 %v94_v2  ;;  %v166_v2 = vld [vmem:[#allocation5 + $0x338] sm:$0xff] }
 0x351   :  { %1456 = vmatprep.subr.mxu1 %v1715_v0 }
 0x352   :  { %1457 = vmatpush3.msra.mxu1 %v87_v3  ;;  %v159_v3 = vld [vmem:[#allocation5 + $0x300] sm:$0xff] }
 0x353   :  { %1458 = vmatprep.subr.mxu1 %v1715_v0 }
 0x354   :  { %1459 = vmatpush3.msra.mxu1 %v80_v4  ;;  %v152_v4 = vld [vmem:[#allocation5 + $0x2c8] sm:$0xff] }
 0x355   :  { %1460 = vmatprep.subr.mxu1 %v1715_v0 }
 0x356   :  { %1461 = vmatpush3.msra.mxu1 %v73_v5  ;;  %v145_v5 = vld [vmem:[#allocation5 + $0x290] sm:$0xff] }
 0x357   :  { %1462 = vmatprep.subr.mxu1 %v1715_v0 }
 0x358   :  { %1463 = vmatpush3.msra.mxu1 %v66_v6  ;;  %v138_v6 = vld [vmem:[#allocation5 + $0x258] sm:$0xff] }
 0x359   :  { %1502 = vmatprep.subr.mxu1 %v189_v10 }
 0x3f9   :  { %v594_v15 = vpop.f32.mrf.mxu1 }
 0x3fa   :  { %v599_v16 = vrot.slane %v594_v15, 1  ;;  %v600_v17 = vrot.slane %v594_v15, 2  ;;  %v601_v18 = vrot.slane %v594_v15, 3  ;;  %v602_v20 = vrot.slane %v594_v15, 4 }
 0x3fb   :  { %v1431_v19 = vpop.f32.mrf.mxu1  ;;  %v603_v21 = vrot.slane %v594_v15, 5  ;;  %v604_v22 = vrot.slane %v594_v15, 6  ;;  %v605_v24 = vrot.slane %v594_v15, 7  ;;  %v614_v28 = vadd.f32 %v594_v15, %v1765_v14 }
 0x3fc   :  { %v615_v23 = vadd.f32 %v599_v16, %v1771_v34  ;;  %v616_v25 = vadd.f32 %v600_v17, %v1775_v35  ;;  %v617_v26 = vadd.f32 %v601_v18, %v1779_v36  ;;  %v618_v27 = vadd.f32 %v602_v20, %v1783_v37  ;;  %v720_v16 = vld [vmem:[%s2050_s2] sm:$0xff] }
 0x3fd   :  { %v619_v29 = vadd.f32 %v603_v21, %v1787_v38  ;;  %v620_v32 = vadd.f32 %v604_v22, %v1791_v39  ;;  %v621_v33 = vadd.f32 %v605_v24, %v1795_v40  ;;  %v187_v40 = vld [vmem:[%s2053_s5 + $0x60] sm:$0xff]  ;;  %v809_v19 = vsub.s32 2, %v1928_v8 }
 0x3fe   :  { %v634_v30 = vrot.slane %v615_v23, 7  ;;  %v636_v31 = vrot.slane %v616_v25, 6  ;;  %v638_v34 = vrot.slane %v617_v26, 5  ;;  %v640_v35 = vrot.slane %v618_v27, 4  ;;  %v131_v24 = vld [vmem:[#allocation5 + $0x220] sm:$0xff]  ;;  %v799_v25 = vld [vmem:[%s2051_s3 + $0x10] sm:$0xff] }
 0x3ff   :  { %v642_v43 = vrot.slane %v619_v29, 3  ;;  %v644_v14 = vrot.slane %v620_v32, 2  ;;  %v646_v44 = vrot.slane %v621_v33, 1  ;;  %v190_v26 = vld [vmem:[%s2053_s5 + $0x78] sm:$0xff]  ;;  %v188_v29 = vld [vmem:[%s2053_s5 + $0x68] sm:$0xff] }
 0x400   :  { %v635_v41 = vsel %vm419_vm1, %v634_v30, %v614_v28  ;;  %v800_v27 = vld [vmem:[%s2051_s3 + $0x18] sm:$0xff]  ;;  %v124_v28 = vld [vmem:[#allocation5 + $0x1e8] sm:$0xff]  ;;  %v117_v30 = vld [vmem:[#allocation5 + $0x1b0] sm:$0xff] }
 0x401   :  { %v637_v42 = vsel %vm422_vm2, %v636_v31, %v635_v41  ;;  %v801_v31 = vld [vmem:[%s2051_s3 + $0x20] sm:$0xff]  ;;  %v186_v32 = vld [vmem:[%s2053_s5 + $0x58] sm:$0xff]  ;;  %v802_v33 = vld [vmem:[%s2051_s3 + $0x28] sm:$0xff] }
 0x402   :  { %v639_v36 = vsel %vm425_vm3, %v638_v34, %v637_v42  ;;  %v110_v41 = vld [vmem:[#allocation5 + $0x178] sm:$0xff]  ;;  %v184_v34 = vld [vmem:[%s2053_s5 + $0x48] sm:$0xff]  ;;  %v103_v42 = vld [vmem:[#allocation5 + $0x140] sm:$0xff] }
 0x403   :  { %v641_v37 = vsel %vm428_vm4, %v640_v35, %v639_v36  ;;  %v803_v35 = vld [vmem:[%s2051_s3 + $0x30] sm:$0xff]  ;;  %v182_v36 = vld [vmem:[%s2053_s5 + $0x38] sm:$0xff] }
 0x404   :  { %v643_v38 = vsel %vm431_vm5, %v642_v43, %v641_v37  ;;  %v804_v43 = vld [vmem:[%s2051_s3 + $0x38] sm:$0xff]  ;;  %v96_v37 = vld [vmem:[#allocation5 + $0x108] sm:$0xff] }
 0x405   :  { %v645_v45 = vsel %vm434_vm6, %v644_v14, %v643_v38  ;;  %v180_v14 = vld [vmem:[%s2053_s5 + $0x28] sm:$0xff] }
 0x406   :  { %v647_v39 = vsel %vm437_vm7, %v646_v44, %v645_v45  ;;  %v89_v44 = vld [vmem:[#allocation5 + $0xd0] sm:$0xff]  ;;  %v805_v45 = vld [vmem:[%s2051_s3 + $0x40] sm:$0xff] }
 0x407   :  { %1465 = vmatmul.mubr.f32.vlgmr.msra.gmra.mxu1 %v647_v39  ;;  %v178_v39 = vld [vmem:[%s2053_s5 + $0x18] sm:$0xff] }
 0x408   :  { %1503 = vmatpush3.msra.mxu1 %v189_v10  ;;  %1518 = vmatprep.mubr.msk.f32.mxu1 %vm513_vm8, %v797_v59  ;;  %v1934_v10 = vld [vmem:[%s2054_s6] sm:$0xff]  ;;  %v724_v59 = vsub.s32 1, %v1928_v8 }
 0x409   :  { %1504 = vmatprep.subr.mxu1 %v187_v40  ;;  %v625_v11 = vrot.slane %v1934_v10, %v624_v9  ;;  %v810_v20 = vrot.slane %v1934_v10, %v809_v19 }
 0x40a   :  { %1505 = vmatpush3.msra.mxu1 %v187_v40  ;;  %v725_v60 = vrot.slane %v1934_v10, %v724_v59 }
 0x40b   :  { %1506 = vmatprep.subr.mxu1 %v185_v47 }
 0x40c   :  { %1507 = vmatpush3.msra.mxu1 %v185_v47  ;;  %v806_v47 = vld [vmem:[%s2051_s3 + $0x48] sm:$0xff]  ;;  %s1717_s3 = smov [#allocation7]  }
 0x40d   :  { %1508 = vmatprep.subr.mxu1 %v183_v50  ;;  %s1191_s5 = sshll.u32 %s1717_s3, 4  ;;  %s1192_s5 = int_to_ptr.vmem [resolvable:$true] %s1191_s5 }
 0x40e   :  { %1509 = vmatpush3.msra.mxu1 %v183_v50  ;;  %s1683_s1 = scalar_lea.vmem %s1192_s5, 32  ;;  %p1688_p11 = scmp.lt.s32.totalorder %s1192_s5, %s1192_s5 }
 0x40f   :  { %1510 = vmatprep.subr.mxu1 %v181_v52  ;;  %p1684_p10 = scmp.ne.s32.totalorder %s1192_s5, %s1683_s1  ;;  %p1689_p12 = scmp.lt.s32.totalorder %s1683_s1, %s1683_s1 }
 0x410   :  { %1511 = vmatpush3.msra.mxu1 %v181_v52  ;;  %v68_v52 = vld [vmem:[#allocation5 + $0x28] sm:$0xff] }
 0x411   :  { %1512 = vmatprep.subr.mxu1 %v179_v53  ;;  %p1690_p13 = por %p1689_p12, %p1688_p11 }
 0x412   :  { %1513 = vmatpush3.msra.mxu1 %v179_v53  ;;  %v174_v53 = vld [vmem:[#allocation5 + $0x378] sm:$0xff] }
 0x413   :  { %1514 = vmatprep.subr.mxu1 %v177_v55  ;;  %p1691_p0 = pnand %p1690_p13, %p1684_p10 }
 0x414   :  { %1515 = vmatpush3.msra.mxu1 %v177_v55  ;;  %v160_v55 = vld [vmem:[#allocation5 + $0x308] sm:$0xff] }
 0x415   :  { %1516 = vmatprep.subr.mxu1 %v175_v57 }
 0x416   :  { %1517 = vmatpush3.msra.mxu1 %v175_v57  ;;  %v146_v57 = vld [vmem:[#allocation5 + $0x298] sm:$0xff] }
 0x417   :  { %1519 = vmatmul.mubr.msk.f32.vlgmr.msra.gmra.mxu1 %vm513_vm8, %v798_v61  ;;  %1552 = vmatprep.subr.mxu1 %v1715_v0 }
 0x418   :  { %1553 = vmatpush3.msra.mxu1 %v173_v1  ;;  %1521 = vmatprep.mubr.msk.f32.mxu1 %vm513_vm8, %v799_v25  ;;  %v83_v25 = vld [vmem:[#allocation5 + $0xa0] sm:$0xff] }
 0x419   :  { %1554 = vmatprep.subr.mxu1 %v1715_v0 }
 0x41a   :  { %1555 = vmatpush3.msra.mxu1 %v166_v2 }
 0x41b   :  { %1556 = vmatprep.subr.mxu1 %v1715_v0  ;;  %1522 = vmatmul.mubr.msk.f32.gmra.mxu1 %vm513_vm8, %v800_v27  ;;  %v69_v27 = vld [vmem:[#allocation5 + $0x30] sm:$0xff] }
 0x41c   :  { %1557 = vmatpush3.msra.mxu1 %v159_v3  ;;  %1524 = vmatprep.mubr.msk.f32.mxu1 %vm513_vm8, %v801_v31 }
 0x41d   :  { %1558 = vmatprep.subr.mxu1 %v1715_v0 }
 0x41e   :  { %1559 = vmatpush3.msra.mxu1 %v152_v4 }
 0x41f   :  { %1560 = vmatprep.subr.mxu1 %v1715_v0  ;;  %1525 = vmatmul.mubr.msk.f32.gmra.mxu1 %vm513_vm8, %v802_v33 }
 0x420   :  { %1561 = vmatpush3.msra.mxu1 %v145_v5  ;;  %1527 = vmatprep.mubr.msk.f32.mxu1 %vm513_vm8, %v803_v35 }
 0x421   :  { %1562 = vmatprep.subr.mxu1 %v1715_v0 }
 0x422   :  { %1563 = vmatpush3.msra.mxu1 %v138_v6 }
 0x423   :  { %1564 = vmatprep.subr.mxu1 %v1715_v0  ;;  %1528 = vmatmul.mubr.msk.f32.gmra.mxu1 %vm513_vm8, %v804_v43 }
 0x424   :  { %1565 = vmatpush3.msra.mxu1 %v131_v24  ;;  %1530 = vmatprep.mubr.msk.f32.mxu1 %vm513_vm8, %v805_v45  ;;  %v90_v24 = vld [vmem:[#allocation5 + $0xd8] sm:$0xff] }
 0x425   :  { %1566 = vmatprep.subr.mxu1 %v1715_v0 }
 0x426   :  { %1567 = vmatpush3.msra.mxu1 %v124_v28  ;;  %v1106_v28 = vsub.s32 3, %v1928_v8 }
 0x427   :  { %1568 = vmatprep.subr.mxu1 %v1715_v0  ;;  %1531 = vmatmul.mubr.msk.f32.gmra.mxu1 %vm513_vm8, %v806_v47 }
 0x428   :  { %1569 = vmatpush3.msra.mxu1 %v117_v30  ;;  %1584 = vmatprep.mubr.msk.f32.mxu1 %vm1716_vm0, %v1715_v0 }
 0x429   :  { %1570 = vmatprep.subr.mxu1 %v1715_v0 }
 0x42a   :  { %1571 = vmatpush3.msra.mxu1 %v110_v41 }
 0x42b   :  { %1572 = vmatprep.subr.mxu1 %v1715_v0 }
 0x42c   :  { %1573 = vmatpush3.msra.mxu1 %v103_v42 }
 0x42d   :  { %1574 = vmatprep.subr.mxu1 %v1715_v0 }
 0x42e   :  { %1575 = vmatpush3.msra.mxu1 %v96_v37 }
 0x42f   :  { %1576 = vmatprep.subr.mxu1 %v1715_v0 }
 0x430   :  { %1577 = vmatpush3.msra.mxu1 %v89_v44 }
 0x431   :  { %1578 = vmatprep.subr.mxu1 %v1715_v0 }
 0x432   :  { %1579 = vmatpush3.msra.mxu1 %v82_v48 }
 0x433   :  { %1580 = vmatprep.subr.mxu1 %v1715_v0 }
 0x434   :  { %1581 = vmatpush3.msra.mxu1 %v75_v51 }
 0x435   :  { %1582 = vmatprep.subr.mxu1 %v1715_v0 }
 0x436   :  { %1583 = vmatpush3.msra.mxu1 %v68_v52 }
 0x4c7   :  { %v715_v12 = vpop.f32.mrf.mxu1 }
 0x4c8   :  { %v716_v13 = vadd.f32 %v715_v12, %v625_v11 }
 0x4c9   :  { %v1466_v15 = vpop.f32.mrf.mxu1 }
 0x4ca   :  { %1635 = vtanh.f32 %v716_v13  ;;  %v132_v15 = vld [vmem:[#allocation5 + $0x228] sm:$0xff] }
 0x4d7   :  { %v1636_v17 = vpop.eup %1635  ;;  %v1520_v21 = vpop.f32.mrf.mxu1 }
 0x4d8   :  { %v721_v18 = vadd.f32 %v1636_v17, %v720_v16  ;;  %v111_v21 = vld [vmem:[#allocation5 + $0x180] sm:$0xff] }
 0x4d9   :  { %v907_v22 = vpop.f32.mrf.mxu1 }
 0x4da   :  { %1500 = vmatmul.mubr.f32.vlgmr.msra.gmra.mxu0 %v721_v18  ;;  %v908_v23 = vadd.f32 %v907_v22, %v810_v20  ;;  %v125_v18 = vld [vmem:[#allocation5 + $0x1f0] sm:$0xff]  ;;  %v118_v20 = vld [vmem:[#allocation5 + $0x1b8] sm:$0xff]  ;;  %v104_v22 = vld [vmem:[#allocation5 + $0x148] sm:$0xff] }
 0x4db   :  { %1549 = vmatprep.mubr.msk.f32.mxu0 %vm1716_vm0, %v1715_v0  ;;  %1534 = vmatpush3.msra.mxu0 %v190_v26  ;;  %v1523_v5 = vpop.f32.mrf.mxu1  ;;  %v76_v26 = vld [vmem:[#allocation5 + $0x68] sm:$0xff] }
 0x4dc   :  { %1637 = vtanh.f32 %v908_v23  ;;  %1535 = vmatprep.subr.mxu0 %v1715_v0  ;;  %v97_v23 = vld [vmem:[#allocation5 + $0x110] sm:$0xff] }
 0x4dd   :  { %1536 = vmatpush3.msra.mxu0 %v188_v29  ;;  %v916_v6 = vpop.f32.mrf.mxu1  ;;  %v1107_v29 = vrot.slane %v1934_v10, %v1106_v28 }
 0x4de   :  { %1537 = vmatprep.subr.mxu0 %v1715_v0 }
 0x4df   :  { %1538 = vmatpush3.msra.mxu0 %v186_v32  ;;  %v1526_v7 = vpop.f32.mrf.mxu1 }
 0x4e0   :  { %1539 = vmatprep.subr.mxu0 %v1715_v0 }
 0x4e1   :  { %1540 = vmatpush3.msra.mxu0 %v184_v34  ;;  %v924_v9 = vpop.f32.mrf.mxu1  ;;  %v1112_v34 = vsub.s32 4, %v1928_v8 }
 0x4e2   :  { %1541 = vmatprep.subr.mxu0 %v1715_v0 }
 0x4e3   :  { %1542 = vmatpush3.msra.mxu0 %v182_v36  ;;  %v1529_v11 = vpop.f32.mrf.mxu1  ;;  %v1113_v42 = vrot.slane %v1934_v10, %v1112_v34 }
 0x4e4   :  { %1543 = vmatprep.subr.mxu0 %v1715_v0 }
 0x4e5   :  { %1544 = vmatpush3.msra.mxu0 %v180_v14  ;;  %v932_v12 = vpop.f32.mrf.mxu1 }
 0x4e6   :  { %1545 = vmatprep.subr.mxu0 %v1715_v0 }
 0x4e7   :  { %1546 = vmatpush3.msra.mxu0 %v178_v39  ;;  %v1532_v13 = vpop.f32.mrf.mxu1 }
 0x4e8   :  { %1547 = vmatprep.subr.mxu0 %v1715_v0 }
 0x4e9   :  { %v1638_v38 = vpop.eup %1637  ;;  %1548 = vmatpush3.msra.mxu0 %v176_v49  ;;  %v940_v16 = vpop.f32.mrf.mxu1 }
 0x4ea   :  { %v956_v40 = vrot.slane %v1638_v38, 3  ;;  %v958_v46 = vrot.slane %v1638_v38, 6  ;;  %1587 = vmatprep.subr.mxu0 %v1715_v0 }
 0x4ec   :  { %v960_v50 = vsel %vm953_vm9, %v956_v40, %v958_v46 }
 0x4ed   :  { %1550 = vmatmul.mubr.msk.f32.vlgmr.msra.gmra.mxu0 %vm513_vm8, %v960_v50 }
 0x4ee   :  { %1619 = vmatprep.mubr.msk.f32.mxu0 %vm1716_vm0, %v1715_v0  ;;  %1588 = vmatpush3.msra.mxu0 %v174_v53 }
 0x4ef   :  { %1589 = vmatprep.subr.mxu0 %v1715_v0 }
 0x4f0   :  { %1590 = vmatpush3.msra.mxu0 %v167_v54 }
 0x4f1   :  { %1591 = vmatprep.subr.mxu0 %v1715_v0 }
 0x4f2   :  { %1592 = vmatpush3.msra.mxu0 %v160_v55 }
 0x4f3   :  { %1593 = vmatprep.subr.mxu0 %v1715_v0 }
 0x4f4   :  { %1594 = vmatpush3.msra.mxu0 %v153_v56 }
 0x4f5   :  { %1595 = vmatprep.subr.mxu0 %v1715_v0 }
 0x4f6   :  { %1596 = vmatpush3.msra.mxu0 %v146_v57 }
 0x4f7   :  { %1597 = vmatprep.subr.mxu0 %v1715_v0 }
 0x4f8   :  { %1598 = vmatpush3.msra.mxu0 %v139_v58 }
 0x4f9   :  { %1599 = vmatprep.subr.mxu0 %v1715_v0 }
 0x4fa   :  { %1600 = vmatpush3.msra.mxu0 %v132_v15 }
 0x4fb   :  { %1601 = vmatprep.subr.mxu0 %v1715_v0 }
 0x4fc   :  { %1602 = vmatpush3.msra.mxu0 %v125_v18 }
 0x4fd   :  { %1603 = vmatprep.subr.mxu0 %v1715_v0 }
 0x4fe   :  { %1604 = vmatpush3.msra.mxu0 %v118_v20 }
 0x4ff   :  { %1605 = vmatprep.subr.mxu0 %v1715_v0 }
 0x500   :  { %1606 = vmatpush3.msra.mxu0 %v111_v21 }
 0x501   :  { %1607 = vmatprep.subr.mxu0 %v1715_v0 }
 0x502   :  { %1608 = vmatpush3.msra.mxu0 %v104_v22 }
 0x503   :  { %1609 = vmatprep.subr.mxu0 %v1715_v0 }
 0x504   :  { %1610 = vmatpush3.msra.mxu0 %v97_v23 }
 0x505   :  { %1611 = vmatprep.subr.mxu0 %v1715_v0 }
 0x506   :  { %1612 = vmatpush3.msra.mxu0 %v90_v24 }
 0x507   :  { %1613 = vmatprep.subr.mxu0 %v1715_v0 }
 0x508   :  { %1614 = vmatpush3.msra.mxu0 %v83_v25 }
 0x509   :  { %1615 = vmatprep.subr.mxu0 %v1715_v0 }
 0x50a   :  { %1616 = vmatpush3.msra.mxu0 %v76_v26 }
 0x50b   :  { %1617 = vmatprep.subr.mxu0 %v1715_v0 }
 0x50c   :  { %1618 = vmatpush3.msra.mxu0 %v69_v27 }
 0x59a   :  { %v792_v61 = vpop.f32.mrf.mxu0 }
 0x59b   :  { %v793_v62 = vadd.f32 %v792_v61, %v725_v60 }
 0x59c   :  { %v1501_v63 = vpop.f32.mrf.mxu0 }
 0x59d   :  { %1639 = vtanh.f32 %v793_v62 }
 0x5aa   :  { %v1640_v1 = vpop.eup %1639 }
 0x5ab   :  { %v949_v2 = vrot.slane %v1640_v1, 3  ;;  %v951_v3 = vrot.slane %v1640_v1, 6 }
 0x5ad   :  { %v954_v4 = vsel %vm953_vm9, %v949_v2, %v951_v3  ;;  %v1030_v17 = vpop.f32.mrf.mxu0 }
 0x5ae   :  { %1585 = vmatmul.mubr.f32.vlgmr.msra.gmra.mxu1 %v954_v4 }
 0x5af   :  { %v1551_v19 = vpop.f32.mrf.mxu0 }
 0x66e   :  { %v1100_v30 = vpop.f32.mrf.mxu1 }
 0x66f   :  { %v1101_v31 = vadd.f32 %v1100_v30, %v1030_v17 }
 0x670   :  { %v1586_v32 = vpop.f32.mrf.mxu1 }
 0x671   :  { %v1108_v33 = vadd.f32 %v1107_v29, %v1101_v31 }
 0x673   :  { %1641 = vtanh.f32 %v1108_v33 }
 0x680   :  { %v1642_v41 = vpop.eup %1641 }
 0x681   :  { %1620 = vmatmul.mubr.f32.vlgmr.msra.gmra.mxu0 %v1642_v41 }
 0x741   :  { %v1180_v35 = vpop.f32.mrf.mxu0 }
 0x742   :  { %v1181_v0 = vadd.f32 %v1180_v35, %v1113_v42 }
 0x743   :  { %v1621_v36 = vpop.f32.mrf.mxu0 }
 0x744   :  { %1184 = vst [vmem:[#allocation7] sm:$0x3] %v1181_v0 }
 0x745   :  { %1694 = shalt.err (!%p1691_p0)
}
 0x746   :  { %1194 = dma.vmem_to_hbm [thread:$0]  %s1192_s5, 32, %s2055_s7, [#allocation4]  }
 0x747   :  { %1707 = dma.done.wait [#allocation4], 32  }
 0x748   :  { %1708 = vsyncadd [#allocation4], 4294967264 }
 0x749   :  { %1198 = vsyncpa [#allocation3], 1 }
 0x74a   :  { %1199 = vsyncpa [#allocation6], 1 }
 0x74b   :  { %1200 = vsyncpa [#allocation4], 1 }

</bundles_post_ra>
